<compile_context>
chip_gen: v5e
topology: v5e:2x2
jax: 0.10.0
libtpu: 0.0.40
codegen_flags: <defaults>
</compile_context>

<pallas_src>
import functools

import jax
import jax.numpy as jnp
from jax.experimental import pallas as pl
from jax.experimental.pallas import tpu as pltpu


_CO_TILE = 128  # output-channel tile; keeps lane dim a multiple of 128


def _att_block_kernel(x_ref, w_ref, b_ref, natt_ref, cla_ref, pooled_ref, *,
                      activation, co, lowp):
    # x_ref block : (1, T, C_in)       native dtype
    # w_ref block : (1, C_in, 2*co)    fused [att | cla] weights, native dtype
    # b_ref block : (1, 1, 2*co)       fused biases, f32
    x = x_ref[0]                                            # (T, C_in)
    w = w_ref[0]                                            # (C_in, 2*co)
    b = b_ref[0].astype(jnp.float32)                        # (1, 2*co)

    # One fused MXU matmul for both 1x1 convs; f32 accumulation; lane dim = 2*co.
    y = jnp.dot(x, w, preferred_element_type=jnp.float32) + b   # (T, 2*co)

    att_logits = y[:, :co]                                  # lane slice at 128*k
    cla_logits = y[:, co:]

    t_dtype = jnp.bfloat16 if lowp else jnp.float32
    # tanh bounds logits to [-1, 1], so the softmax needs no max-subtraction
    # (exp cannot overflow).  Softmax runs over T (sublane axis).
    e = jnp.exp(jnp.tanh(att_logits.astype(t_dtype))).astype(jnp.float32)  # (T, co)
    s = jnp.sum(e, axis=0, keepdims=True)                   # (1, co)
    inv_s = 1.0 / s                                         # exact, tiny vector
    norm_att = e * inv_s                                    # (T, co)

    if activation == "sigmoid":
        cla = jax.nn.sigmoid(cla_logits.astype(t_dtype)).astype(jnp.float32)
    else:  # "linear"
        cla = cla_logits

    pooled = jnp.sum(norm_att * cla, axis=0, keepdims=True)  # (1, co), f32

    natt_ref[0] = norm_att.astype(natt_ref.dtype)
    cla_ref[0] = cla.astype(cla_ref.dtype)
    pooled_ref[0] = pooled.astype(pooled_ref.dtype)


def att_block_v2(x_nct, w_att, b_att, w_cla, b_cla, activation="linear",
                 bf16_transcendentals=None):
    """Forward pass of AttBlockV2.

    Args:
      x_nct: (B, C_in, T) -- same layout as the PyTorch module input (NCW).
      w_att, w_cla: (C_out, C_in, 1) Conv1d weights.
      b_att, b_cla: (C_out,) biases.
      activation: "linear" or "sigmoid".
      bf16_transcendentals: run tanh/exp/sigmoid in bf16 (None = auto, i.e. only
        when the input dtype is bf16).  Pass False on v5e (no bf16 VPU/EUP).
    Returns:
      (pooled (B, C_out) f32, norm_att (B, C_out, T), cla (B, C_out, T))
    """
    B, C_in, T = x_nct.shape
    C_out = w_att.shape[0]
    dtype = x_nct.dtype

    co = _CO_TILE
    n_tiles = pl.cdiv(C_out, co)
    C_pad = n_tiles * co
    pad = C_pad - C_out

    if bf16_transcendentals is None:
        bf16_transcendentals = jnp.dtype(dtype) == jnp.bfloat16

    # --- weight-side glue (tiny tensors) -------------------------------------
    # Fuse att/cla per channel tile, laid out (C_in, 2*co) so channels are lanes.
    wa = jnp.pad(w_att[:, :, 0], ((0, pad), (0, 0))).reshape(n_tiles, co, C_in)
    wc = jnp.pad(w_cla[:, :, 0], ((0, pad), (0, 0))).reshape(n_tiles, co, C_in)
    w_fused = jnp.transpose(jnp.concatenate([wa, wc], axis=1),
                            (0, 2, 1)).astype(dtype)          # (n_tiles, C_in, 2co)
    ba = jnp.pad(b_att, (0, pad)).reshape(n_tiles, co)
    bc = jnp.pad(b_cla, (0, pad)).reshape(n_tiles, co)
    b_fused = jnp.concatenate([ba, bc], axis=1).reshape(
        n_tiles, 1, 2 * co).astype(jnp.float32)               # (n_tiles, 1, 2co)

    # x: (B, C_in, T) -> (B, T, C_in).  T is small for this block, so this
    # wrapper transpose is cheap; it buys lane-dense MXU + stores in-kernel.
    x_btc = jnp.transpose(x_nct, (0, 2, 1))

    kernel = functools.partial(_att_block_kernel, activation=activation, co=co,
                               lowp=bool(bf16_transcendentals))

    # VMEM budget: double-buffered blocks + f32 intermediates (y, e, norm_att, cla).
    itemsize = jnp.dtype(dtype).itemsize
    blocks = (T * C_in * itemsize            # x block
              + C_in * 2 * co * itemsize     # fused weight block
              + 2 * co * 4                   # fused bias block (f32)
              + 2 * T * co * itemsize        # norm_att + cla output blocks
              + co * 4)                      # pooled block (f32)
    intermediates = 6 * T * co * 4           # y (2*T*co) + e + norm_att + cla + margin
    vmem_limit = int(min(max(2 * blocks + intermediates + (2 << 20), 16 << 20),
                         48 << 20))          # stays within v7x's 64 MiB VMEM
    # TODO(synk): for very long T, add a T-tiled grid axis with a two-pass /
    # online softmax; not needed for SED's pooled time axis (T ~ 16-31).
    # TODO(synk): add a pooled-only variant that skips the (B, C_out, T) HBM
    # writes when the caller does not consume norm_att / cla (v5e roofline).

    natt_p, cla_p, pooled_p = pl.pallas_call(
        kernel,
        out_shape=(
            jax.ShapeDtypeStruct((B, T, C_pad), dtype),
            jax.ShapeDtypeStruct((B, T, C_pad), dtype),
            jax.ShapeDtypeStruct((B, 1, C_pad), jnp.float32),
        ),
        grid=(n_tiles, B),
        in_specs=[
            pl.BlockSpec((1, T, C_in), lambda j, b: (b, 0, 0)),
            pl.BlockSpec((1, C_in, 2 * co), lambda j, b: (j, 0, 0)),
            pl.BlockSpec((1, 1, 2 * co), lambda j, b: (j, 0, 0)),
        ],
        out_specs=[
            pl.BlockSpec((1, T, co), lambda j, b: (b, 0, j)),
            pl.BlockSpec((1, T, co), lambda j, b: (b, 0, j)),
            pl.BlockSpec((1, 1, co), lambda j, b: (b, 0, j)),
        ],
        compiler_params=pltpu.CompilerParams(
            dimension_semantics=("parallel", "parallel"),
            vmem_limit_bytes=vmem_limit),
    )(x_btc, w_fused, b_fused)

    # Back to PyTorch's (B, C_out, T) layout; these are small (B*T*C_out) tensors.
    norm_att = jnp.transpose(natt_p[:, :, :C_out], (0, 2, 1))
    cla = jnp.transpose(cla_p[:, :, :C_out], (0, 2, 1))
    pooled = pooled_p[:, 0, :C_out]
    return pooled, norm_att, cla


def xavier_uniform_conv1d(key, out_features, in_features):
    # nn.init.xavier_uniform_ on Conv1d(k=1): fan_in=in_features, fan_out=out_features
    bound = (6.0 / (in_features + out_features)) ** 0.5
    return jax.random.uniform(key, (out_features, in_features, 1),
                              minval=-bound, maxval=bound, dtype=jnp.float32)


def _reference(x_nct, w_att, b_att, w_cla, b_cla, activation="linear"):
    # Pure-JAX reference mirroring the PyTorch forward.
    att = jnp.einsum("bct,oc->bot", x_nct, w_att[:, :, 0]) + b_att[None, :, None]
    norm_att = jax.nn.softmax(jnp.tanh(att), axis=-1)
    cla = jnp.einsum("bct,oc->bot", x_nct, w_cla[:, :, 0]) + b_cla[None, :, None]
    if activation == "sigmoid":
        cla = jax.nn.sigmoid(cla)
    pooled = jnp.sum(norm_att * cla, axis=2)
    return pooled, norm_att, cla


def _run_case(key, B, C_in, C_out, T, activation):
    k_x, k_wa, k_wc = jax.random.split(key, 3)
    x = jax.random.normal(k_x, (B, C_in, T), dtype=jnp.float32)
    w_att = xavier_uniform_conv1d(k_wa, C_out, C_in)
    w_cla = xavier_uniform_conv1d(k_wc, C_out, C_in)
    b_att = jnp.zeros((C_out,), dtype=jnp.float32)
    b_cla = jnp.zeros((C_out,), dtype=jnp.float32)

    pooled, norm_att, cla = att_block_v2(x, w_att, b_att, w_cla, b_cla, activation)
    jax.block_until_ready((pooled, norm_att, cla))

    ref_pooled, ref_natt, ref_cla = _reference(x, w_att, b_att, w_cla, b_cla, activation)
    assert pooled.shape == (B, C_out)
    assert norm_att.shape == (B, C_out, T)
    assert cla.shape == (B, C_out, T)
    # No approximate reciprocal any more; the softmax/pool path is exact up to
    # f32 matmul accumulation differences (MXU vs XLA einsum on real hardware).
    assert jnp.allclose(cla, ref_cla, atol=5e-3, rtol=5e-3)
    assert jnp.allclose(norm_att, ref_natt, atol=5e-3, rtol=5e-3)
    assert jnp.allclose(pooled, ref_pooled, atol=5e-3, rtol=5e-3)


if __name__ == "__main__":
    key = jax.random.PRNGKey(0)
    k1, k2 = jax.random.split(key)

    # Small shape matching the module defaults (single channel tile, sigmoid).
    _run_case(k1, B=2, C_in=32, C_out=8, T=16, activation="sigmoid")
    # Exercise the multi-tile path (C_pad=256 -> n_tiles=2) and linear activation.
    _run_case(k2, B=2, C_in=32, C_out=256, T=16, activation="linear")

    print("KERNEL_OK")
</pallas_src>

<mosaic_0001>
module attributes {stable_mosaic.version = 11 : i64} {
  func.func @_att_block_kernel(%arg0: i32, %arg1: i32, %arg2: memref<1x16x32xf32, #tpu.memory_space<vmem>>, %arg3: memref<1x32x256xf32, #tpu.memory_space<vmem>>, %arg4: memref<1x1x256xf32, #tpu.memory_space<vmem>>, %arg5: memref<1x16x128xf32, #tpu.memory_space<vmem>>, %arg6: memref<1x16x128xf32, #tpu.memory_space<vmem>>, %arg7: memref<1x1x128xf32, #tpu.memory_space<vmem>>) attributes {dimension_semantics = [#tpu.dimension_semantics<parallel>, #tpu.dimension_semantics<parallel>], iteration_bounds = array<i64: 1, 2>, scalar_prefetch = 0 : i64, scratch_operands = 0 : i64, tpu.core_type = #tpu.core_type<tc>, window_params = [{transform_indices = @transform_0, window_bounds = array<i64: 1, 16, 32>}, {transform_indices = @transform_1, window_bounds = array<i64: 1, 32, 256>}, {transform_indices = @transform_2, window_bounds = array<i64: 1, 1, 256>}, {transform_indices = @transform_3, window_bounds = array<i64: 1, 16, 128>}, {transform_indices = @transform_4, window_bounds = array<i64: 1, 16, 128>}, {transform_indices = @transform_5, window_bounds = array<i64: 1, 1, 128>}]} {
    %c0 = arith.constant 0 : index
    %c0_0 = arith.constant 0 : index
    %c0_1 = arith.constant 0 : index
    %0 = vector.load %arg2[%c0, %c0_0, %c0_1] : memref<1x16x32xf32, #tpu.memory_space<vmem>>, vector<1x16x32xf32>
    %1 = vector.shape_cast %0 : vector<1x16x32xf32> to vector<16x32xf32>
    %c0_2 = arith.constant 0 : index
    %c0_3 = arith.constant 0 : index
    %c0_4 = arith.constant 0 : index
    %2 = vector.load %arg3[%c0_2, %c0_3, %c0_4] : memref<1x32x256xf32, #tpu.memory_space<vmem>>, vector<1x32x256xf32>
    %3 = vector.shape_cast %2 : vector<1x32x256xf32> to vector<32x256xf32>
    %c0_5 = arith.constant 0 : index
    %c0_6 = arith.constant 0 : index
    %c0_7 = arith.constant 0 : index
    %4 = vector.load %arg4[%c0_5, %c0_6, %c0_7] : memref<1x1x256xf32, #tpu.memory_space<vmem>>, vector<1x1x256xf32>
    %5 = vector.shape_cast %4 : vector<1x1x256xf32> to vector<1x256xf32>
    %cst = arith.constant dense<0.000000e+00> : vector<16x256xf32>
    %6 = tpu.matmul %1, %3, %cst {dimension_numbers = #tpu.dot_dimension_numbers<[1], [0], [0], [1], [0, 0, 1, 1], [], []>} : vector<16x32xf32>, vector<32x256xf32>, vector<16x256xf32> -> vector<16x256xf32>
    %7 = vector.broadcast %5 : vector<1x256xf32> to vector<16x256xf32>
    %8 = arith.addf %6, %7 : vector<16x256xf32>
    %9 = vector.extract_strided_slice %8 {offsets = [0, 0], sizes = [16, 128], strides = [1, 1]} : vector<16x256xf32> to vector<16x128xf32>
    %10 = vector.extract_strided_slice %8 {offsets = [0, 128], sizes = [16, 128], strides = [1, 1]} : vector<16x256xf32> to vector<16x128xf32>
    %11 = math.tanh %9 : vector<16x128xf32>
    %12 = math.exp %11 : vector<16x128xf32>
    %cst_8 = arith.constant dense<0.000000e+00> : vector<128xf32>
    %13 = vector.multi_reduction <add>, %12, %cst_8 [0] : vector<16x128xf32> to vector<128xf32>
    %14 = vector.shape_cast %13 : vector<128xf32> to vector<1x128xf32>
    %cst_9 = arith.constant 1.000000e+00 : f32
    %15 = vector.broadcast %cst_9 : f32 to vector<1x128xf32>
    %16 = arith.divf %15, %14 : vector<1x128xf32>
    %17 = vector.broadcast %16 : vector<1x128xf32> to vector<16x128xf32>
    %18 = arith.mulf %12, %17 : vector<16x128xf32>
    %19 = arith.negf %10 : vector<16x128xf32>
    %20 = math.exp %19 : vector<16x128xf32>
    %cst_10 = arith.constant 1.000000e+00 : f32
    %21 = vector.broadcast %cst_10 : f32 to vector<16x128xf32>
    %22 = arith.addf %21, %20 : vector<16x128xf32>
    %23 = arith.divf %21, %22 : vector<16x128xf32>
    %24 = arith.mulf %18, %23 : vector<16x128xf32>
    %cst_11 = arith.constant dense<0.000000e+00> : vector<128xf32>
    %25 = vector.multi_reduction <add>, %24, %cst_11 [0] : vector<16x128xf32> to vector<128xf32>
    %26 = vector.shape_cast %25 : vector<128xf32> to vector<1x128xf32>
    %c0_12 = arith.constant 0 : index
    %c0_13 = arith.constant 0 : index
    %c0_14 = arith.constant 0 : index
    %27 = vector.load %arg5[%c0_12, %c0_13, %c0_14] : memref<1x16x128xf32, #tpu.memory_space<vmem>>, vector<1x16x128xf32>
    %28 = vector.shape_cast %27 : vector<1x16x128xf32> to vector<16x128xf32>
    %29 = vector.shape_cast %18 : vector<16x128xf32> to vector<1x16x128xf32>
    tpu.vector_store %arg5[%c0_12, %c0_13, %c0_14], %29 {strides = array<i32>} : memref<1x16x128xf32, #tpu.memory_space<vmem>>, vector<1x16x128xf32>,
    %c0_15 = arith.constant 0 : index
    %c0_16 = arith.constant 0 : index
    %c0_17 = arith.constant 0 : index
    %30 = vector.load %arg6[%c0_15, %c0_16, %c0_17] : memref<1x16x128xf32, #tpu.memory_space<vmem>>, vector<1x16x128xf32>
    %31 = vector.shape_cast %30 : vector<1x16x128xf32> to vector<16x128xf32>
    %32 = vector.shape_cast %23 : vector<16x128xf32> to vector<1x16x128xf32>
    tpu.vector_store %arg6[%c0_15, %c0_16, %c0_17], %32 {strides = array<i32>} : memref<1x16x128xf32, #tpu.memory_space<vmem>>, vector<1x16x128xf32>,
    %c0_18 = arith.constant 0 : index
    %c0_19 = arith.constant 0 : index
    %c0_20 = arith.constant 0 : index
    %33 = vector.load %arg7[%c0_18, %c0_19, %c0_20] : memref<1x1x128xf32, #tpu.memory_space<vmem>>, vector<1x1x128xf32>
    %34 = vector.shape_cast %33 : vector<1x1x128xf32> to vector<1x128xf32>
    %35 = vector.shape_cast %26 : vector<1x128xf32> to vector<1x1x128xf32>
    tpu.vector_store %arg7[%c0_18, %c0_19, %c0_20], %35 {strides = array<i32>} : memref<1x1x128xf32, #tpu.memory_space<vmem>>, vector<1x1x128xf32>,
    return
  }
  func.func @transform_0(%arg0: i32, %arg1: i32) -> (i32, i32, i32) {
    %c0_i32 = arith.constant 0 : i32
    %c0_i32_0 = arith.constant 0 : i32
    %c0_i32_1 = arith.constant 0 : i32
    return %arg1, %c0_i32, %c0_i32_0 : i32, i32, i32
  }
  func.func @transform_1(%arg0: i32, %arg1: i32) -> (i32, i32, i32) {
    %c0_i32 = arith.constant 0 : i32
    %c0_i32_0 = arith.constant 0 : i32
    %c0_i32_1 = arith.constant 0 : i32
    return %arg0, %c0_i32, %c0_i32_0 : i32, i32, i32
  }
  func.func @transform_2(%arg0: i32, %arg1: i32) -> (i32, i32, i32) {
    %c0_i32 = arith.constant 0 : i32
    %c0_i32_0 = arith.constant 0 : i32
    %c0_i32_1 = arith.constant 0 : i32
    return %arg0, %c0_i32, %c0_i32_0 : i32, i32, i32
  }
  func.func @transform_3(%arg0: i32, %arg1: i32) -> (i32, i32, i32) {
    %c0_i32 = arith.constant 0 : i32
    %c0_i32_0 = arith.constant 0 : i32
    return %arg1, %c0_i32, %arg0 : i32, i32, i32
  }
  func.func @transform_4(%arg0: i32, %arg1: i32) -> (i32, i32, i32) {
    %c0_i32 = arith.constant 0 : i32
    %c0_i32_0 = arith.constant 0 : i32
    return %arg1, %c0_i32, %arg0 : i32, i32, i32
  }
  func.func @transform_5(%arg0: i32, %arg1: i32) -> (i32, i32, i32) {
    %c0_i32 = arith.constant 0 : i32
    %c0_i32_0 = arith.constant 0 : i32
    return %arg1, %c0_i32, %arg0 : i32, i32, i32
  }
}

</mosaic_0001>

<bundles_post_ra>
// kernel: tpu_custom_call.1
= control target key start
LH: loop header
LB: loop body
LE: loop exit
PB: predicated region body
PF: predicated region fallthrough
CT: control target
= control target key end

     0   :  { %s1351_s0 = inlined_call_operand.hbm [shape: f32[2,16,32], index: 0, kind: input, shape index: {}]   ;;  %s1352_s1 = inlined_call_operand.hbm [shape: f32[1,32,256], index: 1, kind: input, shape index: {}]   ;;  %s1353_s2 = inlined_call_operand.hbm [shape: f32[1,1,256], index: 2, kind: input, shape index: {}]   ;;  %s1354_s3 = inlined_call_operand.hbm [shape: f32[2,16,128], index: 3, kind: output, shape index: {0}]   ;;  %s1355_s4 = inlined_call_operand.hbm [shape: f32[2,16,128], index: 4, kind: output, shape index: {1}]   ;;  %s1356_s5 = inlined_call_operand.hbm [shape: f32[2,1,128], index: 5, kind: output, shape index: {2}]  }
   0x1   :  { %1359 = sst [smem:[#allocation17_spill]] %s1352_s1 }
   0x2   :  { %1360 = sst [smem:[#allocation18_spill]] %s1353_s2 }
   0x3   :  { %11 = vsyncpa [#allocation3], 0 }
   0x4   :  { %13 = vsyncpa [#allocation3 + $0x1], 0 }
   0x5   :  { %14 = vsyncpa [#allocation6], 0 }
   0x6   :  { %15 = vsyncpa [#allocation4], 0 }
   0x7   :  { %17 = vsyncpa [#allocation4 + $0x1], 0 }
   0x8   :  { %18 = vsyncpa [#allocation10], 0 }
   0x9   :  { %20 = vsyncpa [#allocation10 + $0x1], 0  ;;  %s1135_s18 = smov 0   ;;  %s1137_s19 = smov 0  }
   0xa   :  { %s1139_s20 = smov 0   ;;  %s1141_s21 = smov 0  }
   0xb   :  { %s1143_s22 = smov 0   ;;  %s1145_s23 = smov 0  }
   0xc LB: > { %s1166_s24 = sadd.s32 4294967295, %s1095_s23   ;;  %s1357_s25 = sadd.s32 4294967294, %s1095_s23   ;;  %s1095_s23 = sphi %s1145_s23, %s26_s23   ;;  %s1091_s22 = sphi %s1143_s22, %s1377_s22   ;;  %s1087_s21 = sphi %s1141_s21, %s1376_s21   ;;  %s1083_s20 = sphi %s1139_s20, %s1375_s20   ;;  %s1079_s19 = sphi %s1137_s19, %s1374_s19   ;;  %s1075_s18 = sphi %s1135_s18, %s1373_s18  }
   0xd   : > { %p58_p0 = scmp.ne.s32.totalorder %s1079_s19, %s1075_s18  ;;  %p59_p1 = scmp.eq.s32.totalorder %s1166_s24, 0 }
   0xe   : > { %p136_p2 = scmp.eq.s32.totalorder %s1166_s24, 1  ;;  %p142_p3 = scmp.eq.s32.totalorder %s1357_s25, 1 }
   0xf   : > { %p1177_p4 = por %p59_p1, %p58_p0  ;;  %p704_p5 = scmp.ge.s32.totalorder %s1095_s23, 1 }
  0x10   : > { %p1182_p6 = por %p142_p3, %p58_p0  ;;  %p205_p7 = scmp.lt.s32.totalorder %s1095_s23, 3 }
  0x11   : > { %s1363_s1 = sld [smem:[#allocation17_spill]]  ;;  %s1097_s7 = smov [#allocation5]  }
  0x12   : > { %p1190_p8 = pnand %p704_p5, %p205_p7  ;;  %s221_s8 = sshll.u32 %s1097_s7, 4  ;;  %s222_s8 = int_to_ptr.vmem [resolvable:$true] %s221_s8 }
  0x13   : > { %p707_p11 = scmp.ge.s32.totalorder %s1095_s23, 2  ;;  %s1365_s2 = sld [smem:[#allocation18_spill]] }
  0x14   : > { %p758_p9 = pneg %p1190_p8  ;;  %s1098_s12 = smov 256  }
  0x15   : > { %s1099_s13 = smov 16   ;;  %s1100_s14 = smov [#allocation7]  }
  0x16   : > { %p759_p10 = pnand %p758_p9, %p59_p1  ;;  %s238_s15 = sshll.u32 %s1100_s14, 4  ;;  %s239_s15 = int_to_ptr.vmem [resolvable:$true] %s238_s15 }
  0x17   : > { %s219_s30 = sshll.u32 %s1363_s1, 4  ;;  %s35_s16 = sadd.s32 1, %s1091_s22  ;;  %s220_s30 = int_to_ptr.hbm [resolvable:$true] %s219_s30 }
  0x18   : > { %761 = dma.hbm_to_vmem [thread:$0]  (!%p759_p10), %s220_s30, 1024, %s222_s8, [#allocation6], %s1098_s12, %s1098_s12, %s1099_s13  }
  0x19   : > { %s236_s11 = sshll.u32 %s1365_s2, 4  ;;  %s45_s17 = sadd.s32 1, %s1083_s20  ;;  %s237_s11 = int_to_ptr.hbm [resolvable:$true] %s236_s11 }
  0x1a   : > { %764 = dma.hbm_to_vmem [thread:$0]  (!%p759_p10), %s237_s11, 32, %s239_s15, [#allocation6]  }
  0x1b   : > { %p36_p12 = scmp.ge.s32.totalorder %s35_s16, 2  ;;  %p52_p13 = scmp.ne.s32.totalorder %s1083_s20, %s1079_s19 }
  0x1c   : > { %p53_p0 = scmp.eq.s32.totalorder %s1095_s23, 0  ;;  %p781_p3 = scmp.lt.s32.totalorder %s1095_s23, 2 }
  0x1d   : > { %s1379_s16 = smov (%p36_p12, %s35_s16), 0  ;;  %p1216_p7 = por %p136_p2, %p52_p13 }
  0x1e   : > { %1366 = sst [smem:[#allocation16_spill]] %s1379_s16  ;;  %p1210_p5 = por %p53_p0, %p52_p13 }
  0x1f   : > { %s42_s30 = ssub.s32 %s1091_s22, %s1379_s16  ;;  %s249_s7 = sand.u32 1, %s1083_s20  }
  0x20   : > { %p43_p9 = scmp.eq.s32.totalorder %s42_s30, 0  ;;  %s708_s8 = sshll.u32 %s249_s7, 4 }
  0x21   : > { %s731_s9 = sshll.u32 %s1091_s22, 4  ;;  %s253_s15 = scalar_lea.vmem [#allocation2], %s708_s8 }
  0x22   : > { %s1225_s10 = scalar_select %p43_p9, %s1083_s20, %s45_s17  }
  0x23   : > { %s258_s13 = scalar_lea.hbm %s1351_s0, %s731_s9  ;;  %s261_s25 = sshll.u32 %s253_s15, 4  ;;  %s262_s25 = int_to_ptr.vmem [resolvable:$true] %s261_s25 }
  0x24   : > { %s259_s14 = sshll.u32 %s258_s13, 4  ;;  %p766_p2 = pnand %p781_p3, %p1210_p5  ;;  %s260_s14 = int_to_ptr.hbm [resolvable:$true] %s259_s14 }
  0x25   : > { %s250_s1 = scalar_lea.sflag [#allocation3], %s249_s7  ;;  %s1101_s2 = smov 128  }
  0x26   : > { %s1102_s16 = smov 8   ;;  %273 = sbr.rel (%p1190_p8) target bundleno = 257 (0x101), region = 32 }
  0x27   : > { %768 = dma.hbm_to_vmem [thread:$0]  (!%p766_p2), %s260_s14, 256, %s262_s25, %s250_s1, %s1101_s2, %s1101_s2, %s1102_s16  }
  0x28   : > { %s1237_s17 = sand.u32 (!%p1190_p8), 1, %s1079_s19  }
  0x29   : > { %s1240_s30 = sshll.u32 (!%p1190_p8), %s1237_s17, 4  ;;  %s276_s8 = scalar_lea.sflag (!%p1190_p8), [#allocation3], %s1237_s17 }
  0x2a   : > { %s279_s28 = scalar_lea.vmem (!%p1190_p8), [#allocation2], %s1240_s30 }
  0x2b   : > { %1058 = dma.done.wait (%p1177_p4), %s276_s8, 256  }
  0x2c   : > { %1060 = vsyncadd (%p1177_p4), %s276_s8, 4294967040 }
  0x2d   : > { %1062 = dma.done.wait (%p59_p1), [#allocation6], 1056  }
  0x2e   : > { %1064 = vsyncadd (%p59_p1), [#allocation6], 4294966240  ;;  %v334_v0 = vld [vmem:[#allocation5 + $0x30] sm:$0xff]  ;;  %v332_v1 = vld [vmem:[#allocation5 + $0x20] sm:$0xff]  ;;  %vm342_vm0 = vcmask 261120   ;;  %s732_s1 = sshll.u32 %s1087_s21, 4 }
  0x2f   : > { %734 = vmatpush.msra.mxu2 %v334_v0  ;;  %361 = vmatpush.msra.mxu0 %v334_v0  ;;  %v335_v2 = vld [vmem:[#allocation5 + $0x38] sm:$0xff]  ;;  %v330_v3 = vld [vmem:[#allocation5 + $0x10] sm:$0xff]  ;;  %v333_v4 = vld [vmem:[#allocation5 + $0x28] sm:$0xff]  ;;  %s517_s26 = scalar_lea.hbm %s1355_s4, %s732_s1  ;;  %s482_s6 = sand.u32 1, %s1166_s24  }
  0x30   : > { %738 = vmatpush.msra.mxu3 %v335_v2  ;;  %384 = vmatpush.msra.mxu1 %v335_v2  ;;  %v331_v5 = vld [vmem:[#allocation5 + $0x18] sm:$0xff]  ;;  %v328_v6 = vld [vmem:[#allocation5] sm:$0xff]  ;;  %v329_v9 = vld [vmem:[#allocation5 + $0x8] sm:$0xff]  ;;  %s319_s16 = scalar_lea.vmem [#allocation9], %s1240_s30  ;;  %s520_s9 = sshll.u32 %s517_s26, 4  ;;  %s521_s9 = int_to_ptr.hbm [resolvable:$true] %s520_s9 }
  0x31   : > { %735 = vmatpush.msra.mxu2 %v332_v1  ;;  %362 = vmatpush.msra.mxu0 %v332_v1  ;;  %v327_v7 = vld [vmem:[%s279_s28 + $0x8] sm:$0xff]  ;;  %v326_v8 = vld [vmem:[%s279_s28] sm:$0xff]  ;;  %s518_s7 = sshll.u32 %s319_s16, 4  ;;  %s1272_s24 = scalar_lea.sflag [#allocation10], %s482_s6  ;;  %s519_s7 = int_to_ptr.vmem [resolvable:$true] %s518_s7 }
  0x32   : > { %739 = vmatpush.msra.mxu3 %v333_v4  ;;  %385 = vmatpush.msra.mxu1 %v333_v4  ;;  %v336_v10 = vld [vmem:[#allocation7] sm:$0x3]  ;;  %s963_s11 = sshra.s32 %s521_s9, 4  ;;  %s969_s15 = scalar_lea.hbm %s1355_s4, 32  ;;  %s964_s11 = int_to_ptr.hbm [resolvable:$true] %s963_s11 }
  0x33   : > { %736 = vmatpush.msra.mxu2 %v330_v3  ;;  %363 = vmatpush.msra.mxu0 %v330_v3  ;;  %v338_v11 = vperm.slane %v336_v10, 0  ;;  %v339_v12 = vperm.slane %v336_v10, 1  ;;  %s965_s12 = scalar_lea.hbm %s964_s11, 16  ;;  %p970_p10 = scmp.lt.s32.totalorder %s964_s11, %s1355_s4 }
  0x34   : > { %740 = vmatpush.msra.mxu3 %v331_v5  ;;  %386 = vmatpush.msra.mxu1 %v331_v5  ;;  %p966_p1 = scmp.ne.s32.totalorder %s964_s11, %s965_s12  ;;  %p971_p12 = scmp.lt.s32.totalorder %s969_s15, %s965_s12 }
  0x35   : > { %737 = vmatpush.msra.mxu2 %v328_v6  ;;  %364 = vmatpush.msra.mxu0 %v328_v6 }
  0x36   : > { %718 = vmatmul.msk.f32.vlgmr.msra.gmra.mxu2 %vm342_vm0, %v327_v7  ;;  %717 = vmatmul.msk.f32.vlgmr.msra.gmra.mxu0 %vm342_vm0, %v326_v8  ;;  %p967_p4 = pnand %p966_p1, %p1216_p7  ;;  %p972_p13 = por %p971_p12, %p970_p10 }
  0x37   : > { %741 = vmatpush.msra.mxu3 %v329_v9  ;;  %387 = vmatpush.msra.mxu1 %v329_v9 }
  0x38   : > { %720 = vmatmul.msk.f32.vlgmr.msra.gmra.mxu3 %vm342_vm0, %v327_v7  ;;  %719 = vmatmul.msk.f32.vlgmr.msra.gmra.mxu1 %vm342_vm0, %v326_v8  ;;  %p968_p8 = pneg %p967_p4 }
  0x3a   : > { %p973_p0 = pnand %p972_p13, %p968_p8 }
  0xb3   : > { %v366_v13 = vpop.f32.mrf.mxu0 }
  0xb4   : > { %v367_v14 = vadd.f32 %v366_v13, %v338_v11 }
  0xb5   : > { %v389_v15 = vpop.f32.mrf.mxu1 }
  0xb6   : > { %841 = vtanh.f32 %v367_v14  ;;  %v390_v16 = vadd.f32 %v389_v15, %v339_v12 }
  0xb8   : > { %v721_v17 = vmul.f32 -1.442695, %v390_v16 }
  0xb9   : > { %v369_v18 = vpop.f32.mrf.mxu2 }
  0xba   : > { %v370_v19 = vadd.f32 %v369_v18, %v338_v11  ;;  %843 = vpow2.f32 %v721_v17 }
  0xbb   : > { %v392_v20 = vpop.f32.mrf.mxu3 }
  0xbc   : > { %v842_v21 = vpop.eup %841  ;;  %845 = vtanh.f32 %v370_v19  ;;  %v393_v22 = vadd.f32 %v392_v20, %v339_v12 }
  0xbd   : > { %v397_v23 = vmul.f32 1.442695, %v842_v21 }
  0xbe   : > { %v722_v24 = vmul.f32 -1.442695, %v393_v22 }
  0xc0   : > { %v844_v25 = vpop.eup %843  ;;  %847 = vpow2.f32 %v722_v24 }
  0xc1   : > { %v431_v26 = vadd.f32 1.0, %v844_v25  ;;  %849 = vpow2.f32 %v397_v23 }
  0xc2   : > { %v846_v27 = vpop.eup %845 }
  0xc3   : > { %v399_v28 = vmul.f32 1.442695, %v846_v27  ;;  %851 = vrcp.f32 %v431_v26  ;;  %vm438_vm1 = vweird.f32 %v431_v26  ;;  %v444_v35 = vand.u32 2147483648, %v431_v26 }
  0xc4   : > { %v442_v38 = vand.u32 2147483647, %v431_v26 }
  0xc5   : > { %853 = vpow2.f32 %v399_v28  ;;  %v445_v43 = vor.u32 1.1754944e-38, %v444_v35 }
  0xc6   : > { %v848_v29 = vpop.eup %847  ;;  %vm443_vm4 = vcmp.eq.f32.partialorder %v442_v38, 8.507059e+37 }
  0xc7   : > { %v432_v30 = vadd.f32 1.0, %v848_v29  ;;  %v1252_v31 = vpop.eup %849 }
  0xc9   : > { %v852_v32 = vpop.eup %851  ;;  %855 = vrcp.f32 %v432_v30  ;;  %vm453_vm5 = vweird.f32 %v432_v30  ;;  %v457_v47 = vand.u32 2147483647, %v432_v30  ;;  %v459_v48 = vand.u32 2147483648, %v432_v30 }
  0xca   : > { %v434_v33 = vmul.f32 %v852_v32, %v431_v26  ;;  %vm439_vm2 = vweird.f32 %v852_v32 }
  0xcb   : > { %v1254_v34 = vpop.eup %853  ;;  %vm1258_vm3 = vmor %vm438_vm1, %vm439_vm2  ;;  %v460_v55 = vor.u32 1.1754944e-38, %v459_v48  ;;  %vm458_vm8 = vcmp.eq.f32.partialorder %v457_v47, 8.507059e+37 }
  0xcc   : > { %v401_v36 = vadd.f32 %v1254_v34, %v1252_v31  ;;  %v435_v37 = vsub.f32 1.0, %v434_v33 }
  0xce   : > { %v402_v39 = vrot.slane %v401_v36, 4  ;;  %v436_v40 = vmul.f32 %v852_v32, %v435_v37 }
  0xcf   : > { %v856_v41 = vpop.eup %855 }
  0xd0   : > { %v403_v44 = vadd.f32 %v402_v39, %v401_v36  ;;  %v437_v45 = vadd.f32 %v852_v32, %v436_v40  ;;  %v449_v46 = vmul.f32 %v856_v41, %v432_v30  ;;  %vm454_vm6 = vweird.f32 %v856_v41 }
  0xd1   : > { %vm455_vm7 = vmor %vm453_vm5, %vm454_vm6 }
  0xd2   : > { %v404_v49 = vrot.slane %v403_v44, 2  ;;  %v441_v50 = vsel %vm1258_vm3, %v852_v32, %v437_v45  ;;  %v450_v51 = vsub.f32 1.0, %v449_v46 }
  0xd3   : > { %v446_v52 = vsel %vm443_vm4, %v445_v43, %v441_v50 }
  0xd4   : > { %v405_v53 = vadd.f32 %v404_v49, %v403_v44  ;;  %v451_v54 = vmul.f32 %v856_v41, %v450_v51  ;;  %474 = vst [vmem:[%s319_s16] sm:$0xff] %v446_v52 }
  0xd6   : > { %v406_v56 = vrot.slane %v405_v53, 1  ;;  %v452_v57 = vadd.f32 %v856_v41, %v451_v54 }
  0xd8   : > { %v407_v58 = vadd.f32 %v406_v56, %v405_v53  ;;  %v456_v59 = vsel %vm455_vm7, %v856_v41, %v452_v57 }
  0xd9   : > { %v461_v60 = vsel %vm458_vm8, %v460_v55, %v456_v59 }
  0xda   : > { %857 = vrcp.f32 %v407_v58  ;;  %475 = vst [vmem:[%s319_s16 + $0x8] sm:$0xff] %v461_v60 }
  0xdb   : > { %976 = shalt.err (!%p973_p0)
}
  0xdc   : > { %s1103_s2 = smov 128   ;;  %s1104_s25 = smov 8   ;;  %v419_v0 = vand.u32 2147483648, %v407_v58  ;;  %v417_v2 = vand.u32 2147483647, %v407_v58  ;;  %vm413_vm10 = vweird.f32 %v407_v58 }
  0xdd   : > { %753 = dma.vmem_to_hbm [thread:$0]  (%p1216_p7), %s519_s7, 256, %s521_s9, %s1272_s24, %s1103_s2, %s1103_s2, %s1104_s25  }
  0xde   : > { %s499_s16 = scalar_lea.hbm %s1354_s3, %s732_s1  ;;  %v420_v4 = vor.u32 1.1754944e-38, %v419_v0  ;;  %vm418_vm12 = vcmp.eq.f32.partialorder %v417_v2, 8.507059e+37  ;;  %s312_s7 = scalar_lea.vmem [#allocation8], %s1240_s30 }
  0xdf   : > { %s500_s9 = sshll.u32 %s312_s7, 4  ;;  %s502_s11 = sshll.u32 %s499_s16, 4  ;;  %s501_s9 = int_to_ptr.vmem [resolvable:$true] %s500_s9  ;;  %s503_s11 = int_to_ptr.hbm [resolvable:$true] %s502_s11 }
  0xe0   : > { %v858_v61 = vpop.eup %857  ;;  %s478_s1 = scalar_lea.sflag [#allocation4], %s1237_s17  ;;  %s991_s12 = sshra.s32 %s503_s11, 4  ;;  %s992_s12 = int_to_ptr.hbm [resolvable:$true] %s991_s12 }
  0xe1   : > { %v409_v62 = vmul.f32 %v858_v61, %v407_v58  ;;  %vm414_vm9 = vweird.f32 %v858_v61  ;;  %s993_s13 = scalar_lea.hbm %s992_s12, 16  ;;  %s997_s15 = scalar_lea.hbm %s1354_s3, 32 }
  0xe2   : > { %vm415_vm11 = vmor %vm413_vm10, %vm414_vm9  ;;  %p994_p3 = scmp.ne.s32.totalorder %s992_s12, %s993_s13  ;;  %p998_p2 = scmp.lt.s32.totalorder %s992_s12, %s1354_s3 }
  0xe3   : > { %v410_v63 = vsub.f32 1.0, %v409_v62  ;;  %p999_p1 = scmp.lt.s32.totalorder %s997_s15, %s993_s13 }
  0xe4   : > { %p995_p5 = pnand %p994_p3, %p1216_p7 }
  0xe5   : > { %v411_v1 = vmul.f32 %v858_v61, %v410_v63  ;;  %p1000_p4 = por %p999_p1, %p998_p2 }
  0xe6   : > { %p996_p9 = pneg %p995_p5 }
  0xe7   : > { %v412_v3 = vadd.f32 %v858_v61, %v411_v1 }
  0xe8   : > { %p1001_p8 = pnand %p1000_p4, %p996_p9 }
  0xe9   : > { %v416_v5 = vsel %vm415_vm11, %v858_v61, %v412_v3 }
  0xea   : > { %v421_v6 = vsel %vm418_vm12, %v420_v4, %v416_v5 }
  0xeb   : > { %v423_v7 = vmul.f32 %v1252_v31, %v421_v6  ;;  %v424_v8 = vmul.f32 %v1254_v34, %v421_v6 }
  0xed   : > { %473 = vst [vmem:[%s312_s7 + $0x8] sm:$0xff] %v424_v8  ;;  %v463_v9 = vmul.f32 %v446_v52, %v423_v7  ;;  %v464_v10 = vmul.f32 %v461_v60, %v424_v8 }
  0xee   : > { %472 = vst [vmem:[%s312_s7] sm:$0xff] %v423_v7 }
  0xef   : > { %1004 = shalt.err (!%p1001_p8)
}
  0xf0   : > { %752 = dma.vmem_to_hbm [thread:$0]  (%p1216_p7), %s501_s9, 256, %s503_s11, %s478_s1, %s1103_s2, %s1103_s2, %s1104_s25   ;;  %v465_v11 = vadd.f32 %v464_v10, %v463_v9 }
  0xf1   : > { %s533_s16 = scalar_lea.hbm %s1356_s5, %s1087_s21  ;;  %s325_s7 = scalar_lea.vmem [#allocation11], %s1237_s17 }
  0xf2   : > { %v466_v12 = vrot.slane %v465_v11, 4  ;;  %s535_s12 = sshll.u32 %s325_s7, 4  ;;  %s537_s13 = sshll.u32 %s533_s16, 4  ;;  %s536_s12 = int_to_ptr.vmem [resolvable:$true] %s535_s12  ;;  %s538_s13 = int_to_ptr.hbm [resolvable:$true] %s537_s13 }
  0xf3   : > { %s1019_s30 = sshra.s32 %s538_s13, 4  ;;  %s1025_s21 = scalar_lea.hbm %s1356_s5, 2  ;;  %s1020_s30 = int_to_ptr.hbm [resolvable:$true] %s1019_s30 }
  0xf4   : > { %v467_v13 = vadd.f32 %v466_v12, %v465_v11  ;;  %s1021_s2 = scalar_lea.hbm %s1020_s30, 1  ;;  %p1026_p0 = scmp.lt.s32.totalorder %s1020_s30, %s1356_s5 }
  0xf5   : > { %p1022_p10 = scmp.ne.s32.totalorder %s1020_s30, %s1021_s2  ;;  %p1027_p3 = scmp.lt.s32.totalorder %s1025_s21, %s1021_s2 }
  0xf6   : > { %v468_v14 = vrot.slane %v467_v13, 2 }
  0xf7   : > { %p1023_p12 = pnand %p1022_p10, %p1216_p7  ;;  %p1028_p5 = por %p1027_p3, %p1026_p0 }
  0xf8   : > { %v469_v15 = vadd.f32 %v468_v14, %v467_v13 }
  0xf9   : > { %p1024_p13 = pneg %p1023_p12 }
  0xfa   : > { %v470_v16 = vrot.slane %v469_v15, 1 }
  0xfb   : > { %p1029_p9 = pnand %p1028_p5, %p1024_p13 }
  0xfc   : > { %v471_v17 = vadd.f32 %v470_v16, %v469_v15 }
  0xfe   : > { %476 = vst [vmem:[%s325_s7] sm:$0x1] %v471_v17 }
  0xff   : > { %1032 = shalt.err (!%p1029_p9)
}
 0x100   : > { %754 = dma.vmem_to_hbm [thread:$0]  (%p1216_p7), %s536_s12, 16, %s538_s13, %s1272_s24  }
 0x101 PF: > { %s549_s1 = sand.u32 1, %s1075_s18   ;;  %p770_p2 = pnand %p707_p11, %p1182_p6 }
 0x102   : > { %s550_s14 = scalar_lea.sflag [#allocation4], %s549_s1 }
 0x103   : > { %p771_p1 = pneg %p770_p2 }
 0x105   : > { %1066 = dma.done.wait (%p771_p1), %s550_s14, 256  }
 0x106   : > { %1068 = vsyncadd (%p771_p1), %s550_s14, 4294967040  ;;  %s1371_s15 = sadd.s32 4294967294, %s1095_s23  }
 0x107   : > { %s559_s8 = sand.u32 1, %s1371_s15  }
 0x108   : > { %s560_s28 = scalar_lea.sflag [#allocation10], %s559_s8 }
 0x109   : > { %1070 = dma.done.wait (%p771_p1), %s560_s28, 272  }
 0x10a   : > { %1072 = vsyncadd (%p771_p1), %s560_s28, 4294967024  ;;  %s26_s23 = sadd.s32 1, %s1095_s23   ;;  %s1372_s27 = sld [smem:[#allocation16_spill]] }
 0x10b   : > { %p23_p7 = scmp.ge.s32.totalorder %s26_s23, 4   ;;  %s1373_s18 = smov %s1079_s19 }
 0x10c   : > { %s1374_s19 = smov %s1083_s20  ;;  %s1375_s20 = smov %s1225_s10 }
 0x10d   : > { %s1376_s21 = smov %s1091_s22  ;;  %25 = sbr.rel (!%p23_p7) target bundleno = 12 (0xc), region = 119 }
 0x110   : > { %s1377_s22 = smov %s1372_s27 }
 0x112   :  { %575 = vsyncpa [#allocation3], 1 }
 0x113   :  { %577 = vsyncpa [#allocation3 + $0x1], 1 }
 0x114   :  { %578 = vsyncpa [#allocation6], 1 }
 0x115   :  { %579 = vsyncpa [#allocation4], 1 }
 0x116   :  { %581 = vsyncpa [#allocation4 + $0x1], 1 }
 0x117   :  { %582 = vsyncpa [#allocation10], 1 }
 0x118   :  { %584 = vsyncpa [#allocation10 + $0x1], 1 }

</bundles_post_ra>
